<compile_context>
chip_gen: v7x
topology: tpu7x:2x2x1
jax: 0.10.0
libtpu: 0.0.40
codegen_flags: <defaults>
</compile_context>

<pallas_src>
import jax
import jax.numpy as jnp
from jax.experimental import pallas as pl
from jax.experimental.pallas import tpu as pltpu


def _round_up(n, m):
    return ((n + m - 1) // m) * m


# ----------------------------------------------------------------------------
# Pallas kernel: fused 3-layer MLP  (relu -> relu -> linear)
# ----------------------------------------------------------------------------
def mlp_kernel(x_ref, w1_ref, b1_ref, w2_ref, b2_ref, w3_ref, b3_ref, o_ref):
    x = x_ref[...]                                   # (tb, 2)
    w1 = w1_ref[...]                                 # (2, 128)

    # Layer 1: K=2 contraction as two VPU broadcast-FMAs; bias folded in.
    h1 = x[:, 0:1] * w1[0:1, :] + x[:, 1:2] * w1[1:2, :] + b1_ref[...]
    h1 = jnp.maximum(h1, 0.0)                        # (tb, 128)

    # Layer 2: the only real MXU matmul (128 x 128), f32 accumulation.
    h2 = jnp.dot(h1, w2_ref[...], preferred_element_type=jnp.float32)
    h2 = jnp.maximum(h2 + b2_ref[...], 0.0)          # (tb, 128)

    # Layer 3: N=1 output -> VPU multiply + XLU lane reduction; scalar bias from
    # SMEM.  Result is stored as a lane-dense (1, tb) row (unmasked stores).
    row = jnp.sum(h2 * w3_ref[...], axis=-1) + b3_ref[0]     # (tb,)
    o_ref[...] = row[None, :].astype(o_ref.dtype)            # (1, tb)


def mynet_forward(x, params, *, tile_b=2048):
    """x: (B, 2) float32 -> (B, 1) float32.

    params:
      w1 (2, 128),   b1 (1, 128)   -- stored (in, out)
      w2 (128, 128), b2 (1, 128)   -- stored (in, out)
      w3 (1, 128),   b3 (1,)       -- stored (out, in) for the lane reduction
    """
    B, Fin = x.shape
    w1, b1 = params["w1"], params["b1"]
    w2, b2 = params["w2"], params["b2"]
    w3, b3 = params["w3"], params["b3"]

    # --- batch tile selection ------------------------------------------------
    if B <= tile_b:
        tb = _round_up(B, 8)            # single step covers the whole batch
    else:
        tb = _round_up(tile_b, 128)     # multi-step: 128 | tb keeps out rows lane-dense
    # v7x has two TensorCores: keep >= 2 "parallel" grid steps for largish
    # batches instead of collapsing them into one giant single-step tile.
    if B >= 1024 and B <= tb:
        tb = _round_up(pl.cdiv(B, 2), 128)
    n_tiles = pl.cdiv(B, tb)

    def rep(shape):
        # Weights / biases: same whole-array block at every grid step
        # (constant index_map -> no re-fetch across steps).
        return pl.BlockSpec(shape, lambda i: (0, 0))

    out = pl.pallas_call(
        mlp_kernel,
        out_shape=jax.ShapeDtypeStruct((1, n_tiles * tb), x.dtype),
        grid_spec=pltpu.PrefetchScalarGridSpec(
            num_scalar_prefetch=0,
            grid=(n_tiles,),
            in_specs=[
                pl.BlockSpec((tb, Fin), lambda i: (i, 0)),               # x tile
                rep(w1.shape), rep(b1.shape),
                rep(w2.shape), rep(b2.shape),
                rep(w3.shape),
                pl.BlockSpec(memory_space=pltpu.MemorySpace.SMEM),       # b3 scalar
            ],
            out_specs=pl.BlockSpec((1, tb), lambda i: (0, i)),           # lane-dense row
        ),
        compiler_params=pltpu.CompilerParams(
            dimension_semantics=("parallel",),
            vmem_limit_bytes=32 * 1024 * 1024),
    )(x, w1, b1, w2, b2, w3, b3)

    # Columns >= B come from the clipped edge block (garbage rows); slice them
    # off and restore the (B, 1) PyTorch output shape.
    return out[0, :B][:, None]


# ----------------------------------------------------------------------------
# Deterministic parameter construction (mirrors layer_init + NoisyLinear init)
# ----------------------------------------------------------------------------
def make_params(key):
    """Orthogonal weights (w_scale=1.0), zero biases — exactly layer_init()."""
    def ortho(key, fan_out, fan_in):
        # orthogonal init on the PyTorch-layout (out, in) weight
        return jax.nn.initializers.orthogonal()(key, (fan_out, fan_in), jnp.float32)

    k1, k2, k3 = jax.random.split(key, 3)
    w1 = jnp.transpose(ortho(k1, 128, 2))      # (2, 128)   -- (in, out)
    w2 = jnp.transpose(ortho(k2, 128, 128))    # (128, 128) -- (in, out)
    w3 = ortho(k3, 1, 128)                     # (1, 128)   -- kept (out, in)
    b1 = jnp.zeros((1, 128), jnp.float32)      # constant_(bias, 0)
    b2 = jnp.zeros((1, 128), jnp.float32)
    b3 = jnp.zeros((1,), jnp.float32)
    # NoisyLinear also creates weight_sigma / bias_sigma (= 0.4/sqrt(fan)),
    # but they do not affect the eval-mode forward pass.
    return {"w1": w1, "b1": b1, "w2": w2, "b2": b2, "w3": w3, "b3": b3}


def mynet_reference(x, p):
    h1 = jnp.maximum(x @ p["w1"] + p["b1"], 0.0)
    h2 = jnp.maximum(h1 @ p["w2"] + p["b2"], 0.0)
    return h2 @ p["w3"].T + p["b3"]


if __name__ == "__main__":
    key = jax.random.PRNGKey(0)
    kx, kp = jax.random.split(key)
    params = make_params(kp)

    # Small batch: single grid step.
    B = 16
    x = jax.random.normal(kx, (B, 2), jnp.float32)
    out = jax.block_until_ready(mynet_forward(x, params))
    ref = mynet_reference(x, params)
    assert out.shape == (B, 1)
    assert jnp.allclose(out, ref, atol=1e-5, rtol=1e-5), "mismatch vs reference (B=16)"

    # Non-multiple-of-8 batch: single step with a clipped edge block (no jnp.pad).
    B2 = 300
    x2 = jax.random.normal(jax.random.PRNGKey(1), (B2, 2), jnp.float32)
    out2 = jax.block_until_ready(mynet_forward(x2, params))
    ref2 = mynet_reference(x2, params)
    assert out2.shape == (B2, 1)
    assert jnp.allclose(out2, ref2, atol=1e-5, rtol=1e-5), "mismatch vs reference (B=300)"

    # Largish batch: exercises the >=2-step (v7x dual-TC) path + clipped edge block.
    B3 = 1100
    x3 = jax.random.normal(jax.random.PRNGKey(2), (B3, 2), jnp.float32)
    out3 = jax.block_until_ready(mynet_forward(x3, params))
    ref3 = mynet_reference(x3, params)
    assert out3.shape == (B3, 1)
    assert jnp.allclose(out3, ref3, atol=1e-5, rtol=1e-5), "mismatch vs reference (B=1100)"

    print("KERNEL_OK")
</pallas_src>

<mosaic_0001>
module attributes {stable_mosaic.version = 11 : i64} {
  func.func @mlp_kernel(%arg0: i32, %arg1: memref<16x2xf32, #tpu.memory_space<vmem>>, %arg2: memref<2x128xf32, #tpu.memory_space<vmem>>, %arg3: memref<1x128xf32, #tpu.memory_space<vmem>>, %arg4: memref<128x128xf32, #tpu.memory_space<vmem>>, %arg5: memref<1x128xf32, #tpu.memory_space<vmem>>, %arg6: memref<1x128xf32, #tpu.memory_space<vmem>>, %arg7: memref<1xf32, #tpu.memory_space<smem>>, %arg8: memref<1x16xf32, #tpu.memory_space<vmem>>) attributes {dimension_semantics = [#tpu.dimension_semantics<parallel>], iteration_bounds = array<i64: 1>, scalar_prefetch = 0 : i64, scratch_operands = 0 : i64, tpu.core_type = #tpu.core_type<tc>, window_params = [{transform_indices = @transform_0, window_bounds = array<i64: 16, 2>}, {pipeline_mode = #tpu.pipeline_mode<synchronous>, transform_indices = @transform_1, window_bounds = array<i64: 2, 128>}, {pipeline_mode = #tpu.pipeline_mode<synchronous>, transform_indices = @transform_2, window_bounds = array<i64: 1, 128>}, {pipeline_mode = #tpu.pipeline_mode<synchronous>, transform_indices = @transform_3, window_bounds = array<i64: 128, 128>}, {pipeline_mode = #tpu.pipeline_mode<synchronous>, transform_indices = @transform_4, window_bounds = array<i64: 1, 128>}, {pipeline_mode = #tpu.pipeline_mode<synchronous>, transform_indices = @transform_5, window_bounds = array<i64: 1, 128>}, {transform_indices = @transform_6, window_bounds = array<i64: 1>}, {transform_indices = @transform_7, window_bounds = array<i64: 1, 16>}]} {
    %c0 = arith.constant 0 : index
    %c0_0 = arith.constant 0 : index
    %0 = vector.load %arg1[%c0, %c0_0] : memref<16x2xf32, #tpu.memory_space<vmem>>, vector<16x2xf32>
    %c0_1 = arith.constant 0 : index
    %c0_2 = arith.constant 0 : index
    %1 = vector.load %arg2[%c0_1, %c0_2] : memref<2x128xf32, #tpu.memory_space<vmem>>, vector<2x128xf32>
    %2 = vector.extract_strided_slice %0 {offsets = [0, 0], sizes = [16, 1], strides = [1, 1]} : vector<16x2xf32> to vector<16x1xf32>
    %3 = vector.extract_strided_slice %1 {offsets = [0, 0], sizes = [1, 128], strides = [1, 1]} : vector<2x128xf32> to vector<1x128xf32>
    %4 = vector.broadcast %2 : vector<16x1xf32> to vector<16x128xf32>
    %5 = vector.broadcast %3 : vector<1x128xf32> to vector<16x128xf32>
    %6 = arith.mulf %4, %5 : vector<16x128xf32>
    %7 = vector.extract_strided_slice %0 {offsets = [0, 1], sizes = [16, 1], strides = [1, 1]} : vector<16x2xf32> to vector<16x1xf32>
    %8 = vector.extract_strided_slice %1 {offsets = [1, 0], sizes = [1, 128], strides = [1, 1]} : vector<2x128xf32> to vector<1x128xf32>
    %9 = vector.broadcast %7 : vector<16x1xf32> to vector<16x128xf32>
    %10 = vector.broadcast %8 : vector<1x128xf32> to vector<16x128xf32>
    %11 = arith.mulf %9, %10 : vector<16x128xf32>
    %12 = arith.addf %6, %11 : vector<16x128xf32>
    %c0_3 = arith.constant 0 : index
    %c0_4 = arith.constant 0 : index
    %13 = vector.load %arg3[%c0_3, %c0_4] : memref<1x128xf32, #tpu.memory_space<vmem>>, vector<1x128xf32>
    %14 = vector.broadcast %13 : vector<1x128xf32> to vector<16x128xf32>
    %15 = arith.addf %12, %14 : vector<16x128xf32>
    %cst = arith.constant 0.000000e+00 : f32
    %16 = vector.broadcast %cst : f32 to vector<16x128xf32>
    %17 = arith.maximumf %15, %16 : vector<16x128xf32>
    %c0_5 = arith.constant 0 : index
    %c0_6 = arith.constant 0 : index
    %18 = vector.load %arg4[%c0_5, %c0_6] : memref<128x128xf32, #tpu.memory_space<vmem>>, vector<128x128xf32>
    %cst_7 = arith.constant dense<0.000000e+00> : vector<16x128xf32>
    %19 = tpu.matmul %17, %18, %cst_7 {dimension_numbers = #tpu.dot_dimension_numbers<[1], [0], [0], [1], [0, 0, 1, 1], [], []>} : vector<16x128xf32>, vector<128x128xf32>, vector<16x128xf32> -> vector<16x128xf32>
    %c0_8 = arith.constant 0 : index
    %c0_9 = arith.constant 0 : index
    %20 = vector.load %arg5[%c0_8, %c0_9] : memref<1x128xf32, #tpu.memory_space<vmem>>, vector<1x128xf32>
    %21 = vector.broadcast %20 : vector<1x128xf32> to vector<16x128xf32>
    %22 = arith.addf %19, %21 : vector<16x128xf32>
    %cst_10 = arith.constant 0.000000e+00 : f32
    %23 = vector.broadcast %cst_10 : f32 to vector<16x128xf32>
    %24 = arith.maximumf %22, %23 : vector<16x128xf32>
    %c0_11 = arith.constant 0 : index
    %c0_12 = arith.constant 0 : index
    %25 = vector.load %arg6[%c0_11, %c0_12] : memref<1x128xf32, #tpu.memory_space<vmem>>, vector<1x128xf32>
    %26 = vector.broadcast %25 : vector<1x128xf32> to vector<16x128xf32>
    %27 = arith.mulf %24, %26 : vector<16x128xf32>
    %cst_13 = arith.constant dense<0.000000e+00> : vector<16xf32>
    %28 = vector.multi_reduction <add>, %27, %cst_13 [1] : vector<16x128xf32> to vector<16xf32>
    %c0_14 = arith.constant 0 : index
    %29 = memref.load %arg7[%c0_14] : memref<1xf32, #tpu.memory_space<smem>>
    %30 = vector.broadcast %29 : f32 to vector<16xf32>
    %31 = arith.addf %28, %30 : vector<16xf32>
    %32 = vector.shape_cast %31 : vector<16xf32> to vector<1x16xf32>
    %c0_15 = arith.constant 0 : index
    %c0_16 = arith.constant 0 : index
    %33 = vector.load %arg8[%c0_15, %c0_16] : memref<1x16xf32, #tpu.memory_space<vmem>>, vector<1x16xf32>
    tpu.vector_store %arg8[%c0_15, %c0_16], %32 {strides = array<i32>} : memref<1x16xf32, #tpu.memory_space<vmem>>, vector<1x16xf32>,
    return
  }
  func.func @transform_0(%arg0: i32) -> (i32, i32) {
    %c0_i32 = arith.constant 0 : i32
    %c0_i32_0 = arith.constant 0 : i32
    return %arg0, %c0_i32 : i32, i32
  }
  func.func @transform_1(%arg0: i32) -> (i32, i32) {
    %c0_i32 = arith.constant 0 : i32
    %c0_i32_0 = arith.constant 0 : i32
    %c0_i32_1 = arith.constant 0 : i32
    return %c0_i32, %c0_i32_0 : i32, i32
  }
  func.func @transform_2(%arg0: i32) -> (i32, i32) {
    %c0_i32 = arith.constant 0 : i32
    %c0_i32_0 = arith.constant 0 : i32
    %c0_i32_1 = arith.constant 0 : i32
    return %c0_i32, %c0_i32_0 : i32, i32
  }
  func.func @transform_3(%arg0: i32) -> (i32, i32) {
    %c0_i32 = arith.constant 0 : i32
    %c0_i32_0 = arith.constant 0 : i32
    %c0_i32_1 = arith.constant 0 : i32
    return %c0_i32, %c0_i32_0 : i32, i32
  }
  func.func @transform_4(%arg0: i32) -> (i32, i32) {
    %c0_i32 = arith.constant 0 : i32
    %c0_i32_0 = arith.constant 0 : i32
    %c0_i32_1 = arith.constant 0 : i32
    return %c0_i32, %c0_i32_0 : i32, i32
  }
  func.func @transform_5(%arg0: i32) -> (i32, i32) {
    %c0_i32 = arith.constant 0 : i32
    %c0_i32_0 = arith.constant 0 : i32
    %c0_i32_1 = arith.constant 0 : i32
    return %c0_i32, %c0_i32_0 : i32, i32
  }
  func.func @transform_6(%arg0: i32) -> i32 {
    %c0_i32 = arith.constant 0 : i32
    %c0_i32_0 = arith.constant 0 : i32
    return %c0_i32 : i32
  }
  func.func @transform_7(%arg0: i32) -> (i32, i32) {
    %c0_i32 = arith.constant 0 : i32
    %c0_i32_0 = arith.constant 0 : i32
    return %c0_i32, %arg0 : i32, i32
  }
}

</mosaic_0001>

<bundles_post_ra>
// kernel: tpu_custom_call.1
= control target key start
LH: loop header
LB: loop body
LE: loop exit
PB: predicated region body
PF: predicated region fallthrough
CT: control target
= control target key end

     0   :  { %13 = vsyncpa [#allocation4], 0  ;;  %s475_s0 = inlined_call_operand.vmem [shape: f32[16,2], index: 0, kind: input, shape index: {}]   ;;  %s476_s1 = inlined_call_operand.vmem [shape: f32[2,128], index: 1, kind: input, shape index: {}]   ;;  %s477_s2 = inlined_call_operand.vmem [shape: f32[1,128], index: 2, kind: input, shape index: {}]   ;;  %s478_s3 = inlined_call_operand.hbm [shape: f32[128,128], index: 3, kind: input, shape index: {}]   ;;  %s479_s4 = inlined_call_operand.vmem [shape: f32[1,128], index: 4, kind: input, shape index: {}]   ;;  %s480_s5 = inlined_call_operand.vmem [shape: f32[1,128], index: 5, kind: input, shape index: {}]   ;;  %s481_s6 = inlined_call_operand.<no memory space> [shape: f32[1], index: 6, kind: input, shape index: {}]   ;;  %s482_s7 = inlined_call_operand.hbm [shape: f32[1,16], index: 7, kind: output, shape index: {}]  }
   0x1   :  { %14 = vsyncpa [#allocation5], 0  ;;  %s384_s24 = smov [#allocation3]   ;;  %s336_s28 = scalar_lea.hbm %s478_s3, 2048 }
   0x2   :  { %s26_s25 = sshll.u32 %s384_s24, 4  ;;  %p337_p0 = scmp.ne.s32.totalorder %s478_s3, %s336_s28  ;;  %s27_s25 = int_to_ptr.vmem [resolvable:$true] %s26_s25 }
   0x3   :  { %p340_p1 = scmp.lt.u32.totalorder %s336_s28, %s478_s3 }
   0x5   :  { %p342_p2 = pnand %p340_p1, %p337_p0 }
   0x7   :  { %345 = shalt.err (!%p342_p2)
}
   0x8   :  { %s346_s10 = scalar_lea.vmem %s27_s25, 2048  ;;  %p351_p4 = scmp.lt.s32.totalorder %s27_s25, %s27_s25 }
   0x9   :  { %p347_p3 = scmp.ne.s32.totalorder %s27_s25, %s346_s10  ;;  %p352_p5 = scmp.lt.s32.totalorder %s346_s10, %s346_s10 }
   0xb   :  { %p353_p6 = por %p352_p5, %p351_p4 }
   0xd   :  { %p354_p7 = pnand %p353_p6, %p347_p3 }
   0xf   :  { %357 = shalt.err (!%p354_p7)
}
  0x10   :  { %s385_s11 = smov 128   ;;  %s386_s12 = smov 8  }
  0x11   :  { %32 = dma.hbm_to_vmem [thread:$0]  %s478_s3, 2048, %s27_s25, [#allocation4], %s385_s11, %s385_s11, %s386_s12  }
  0x12   :  { %380 = dma.done.wait [#allocation4], 2048  }
  0x13   :  { %381 = vsyncadd [#allocation4], 4294965248  ;;  %v387_v0 = vmov 0   ;;  %v43_v1 = vld [vmem:[%s475_s0 + $0x8] sm:$0xff]  ;;  %v42_v2 = vld [vmem:[%s475_s0] sm:$0xff]  ;;  %v388_v9 = vmov 1   ;;  %v55_v28 = vlaneseq  ;;  %v202_v62 = vstv %s481_s6 }
  0x14   :  { %334 = vset.pattern.permute.xlu1 %v387_v0  ;;  %332 = vset.pattern.permute.xlu0 %v387_v0  ;;  %v88_v3 = vld [vmem:[#allocation3] sm:$0xff]  ;;  %v89_v4 = vld [vmem:[#allocation3 + $0x8] sm:$0xff]  ;;  %v90_v5 = vld [vmem:[#allocation3 + $0x10] sm:$0xff]  ;;  %vm218_vm0 = vcmask 130112   ;;  %vm221_vm1 = vcmask 122880  }
  0x15   :  { %52 = vperm.xlu1 %334, %v43_v1   ;;  %47 = vperm.xlu0 %332, %v42_v2   ;;  %v91_v6 = vld [vmem:[#allocation3 + $0x18] sm:$0xff]  ;;  %v294_v7 = vpack.c.bf16 %v89_v4, %v88_v3  ;;  %v92_v10 = vld [vmem:[#allocation3 + $0x20] sm:$0xff]  ;;  %v93_v11 = vld [vmem:[#allocation3 + $0x28] sm:$0xff]  ;;  %v56_v29 = vshrl.u32 %v55_v28, 7  ;;  %v208_v60 = vand.u32 127, %v55_v28 }
  0x16   :  { %v298_v8 = vpack.c.bf16 %v91_v6, %v90_v5  ;;  %v302_v12 = vpack.c.bf16 %v93_v11, %v92_v10  ;;  %v94_v13 = vld [vmem:[#allocation3 + $0x30] sm:$0xff]  ;;  %v95_v14 = vld [vmem:[#allocation3 + $0x38] sm:$0xff]  ;;  %v96_v16 = vld [vmem:[#allocation3 + $0x40] sm:$0xff] }
  0x17   :  { %295 = vmatprep.subr.bf16.mxu0 %v294_v7  ;;  %v306_v15 = vpack.c.bf16 %v95_v14, %v94_v13  ;;  %v97_v17 = vld [vmem:[#allocation3 + $0x48] sm:$0xff]  ;;  %v98_v19 = vld [vmem:[#allocation3 + $0x50] sm:$0xff]  ;;  %v99_v20 = vld [vmem:[#allocation3 + $0x58] sm:$0xff]  ;;  %v57_v30 = vsub.s32 0, %v56_v29  ;;  %v71_v31 = vsub.s32 1, %v56_v29  ;;  %v213_v61 = vadd.s32 4294967288, %v208_v60 }
  0x18   :  { %297 = vmatpush3.bf16.msra.mxu0 %v294_v7  ;;  %v310_v18 = vpack.c.bf16 %v97_v17, %v96_v16  ;;  %v314_v21 = vpack.c.bf16 %v99_v20, %v98_v19  ;;  %v100_v22 = vld [vmem:[#allocation3 + $0x60] sm:$0xff]  ;;  %v101_v23 = vld [vmem:[#allocation3 + $0x68] sm:$0xff]  ;;  %v102_v25 = vld [vmem:[#allocation3 + $0x70] sm:$0xff] }
  0x19   :  { %335 = vset.pattern.permute.xlu1 %v388_v9  ;;  %333 = vset.pattern.permute.xlu0 %v388_v9  ;;  %v318_v24 = vpack.c.bf16 %v101_v23, %v100_v22  ;;  %v103_v26 = vld [vmem:[#allocation3 + $0x78] sm:$0xff]  ;;  %v44_v32 = vld [vmem:[%s476_s1] sm:$0x3]  ;;  %v216_v63 = vsub.s32 %v213_v61, %v56_v29 }
  0x1a   :  { %66 = vperm.xlu1 %335, %v43_v1   ;;  %62 = vperm.xlu0 %333, %v42_v2   ;;  %v322_v27 = vpack.c.bf16 %v103_v26, %v102_v25  ;;  %v58_v35 = vrot.slane %v44_v32, %v57_v30  ;;  %v72_v36 = vrot.slane %v44_v32, %v71_v31  ;;  %v238_v43 = vld [vmem:[%s477_s2] ss:$0 sm:$0xff] }
  0x1b   :  { %299 = vmatprep.subr.bf16.mxu0 %v298_v8  ;;  %v239_v50 = vld [vmem:[%s479_s4] ss:$0 sm:$0xff]  ;;  %v211_v1 = vsub.s32 %v208_v60, %v56_v29  ;;  %s389_s4 = smov [#allocation6]  }
  0x1c   :  { %301 = vmatpush3.bf16.msra.mxu0 %v298_v8  ;;  %v240_v55 = vld [vmem:[%s480_s5] ss:$0 sm:$0xff]  ;;  %s229_s5 = sshll.u32 %s389_s4, 4  ;;  %s230_s5 = int_to_ptr.vmem [resolvable:$true] %s229_s5 }
  0x1d   :  { %303 = vmatprep.subr.bf16.mxu0 %v302_v12  ;;  %s358_s25 = scalar_lea.vmem %s230_s5, 16  ;;  %s362_s26 = scalar_lea.vmem %s230_s5, 32 }
  0x1e   :  { %p359_p8 = scmp.ne.s32.totalorder %s230_s5, %s358_s25  ;;  %p363_p9 = scmp.lt.s32.totalorder %s230_s5, %s230_s5 }
  0x1f   :  { %p364_p10 = scmp.lt.s32.totalorder %s362_s26, %s358_s25 }
  0x20   :  { %305 = vmatpush3.bf16.msra.mxu0 %v302_v12 }
  0x21   :  { %307 = vmatprep.subr.bf16.mxu0 %v306_v15  ;;  %p365_p11 = por %p364_p10, %p363_p9 }
  0x23   :  { %p366_p12 = pnand %p365_p11, %p359_p8 }
  0x24   :  { %309 = vmatpush3.bf16.msra.mxu0 %v306_v15 }
  0x25   :  { %311 = vmatprep.subr.bf16.mxu0 %v310_v18 }
  0x28   :  { %313 = vmatpush3.bf16.msra.mxu0 %v310_v18 }
  0x29   :  { %315 = vmatprep.subr.bf16.mxu0 %v314_v21 }
  0x2c   :  { %317 = vmatpush3.bf16.msra.mxu0 %v314_v21 }
  0x2d   :  { %319 = vmatprep.subr.bf16.mxu0 %v318_v24 }
  0x30   :  { %321 = vmatpush3.bf16.msra.mxu0 %v318_v24 }
  0x31   :  { %323 = vmatprep.subr.bf16.mxu0 %v322_v27 }
  0x34   :  { %325 = vmatpush3.bf16.msra.mxu0 %v322_v27 }
  0x94   :  { %v48_v33 = vpop.permute.xlu0 %47  ;;  %v53_v34 = vpop.permute.xlu1 %52 }
  0x95   :  { %v59_v39 = vmul.f32 %v58_v35, %v48_v33  ;;  %v60_v40 = vmul.f32 %v58_v35, %v53_v34 }
  0x99   :  { %v67_v37 = vpop.permute.xlu1 %66  ;;  %v63_v38 = vpop.permute.xlu0 %62 }
  0x9a   :  { %v74_v41 = vmul.f32 %v72_v36, %v67_v37  ;;  %v73_v42 = vmul.f32 %v72_v36, %v63_v38 }
  0x9c   :  { %v76_v44 = vadd.f32 %v74_v41, %v60_v40  ;;  %v75_v45 = vadd.f32 %v73_v42, %v59_v39 }
  0x9e   :  { %v84_v46 = vadd.f32 %v238_v43, %v75_v45  ;;  %v85_v47 = vadd.f32 %v238_v43, %v76_v44 }
  0xa0   :  { %v86_v48 = vmax.f32 %v84_v46, 0.0  ;;  %v87_v49 = vmax.f32 %v85_v47, 0.0 }
  0xa2   :  { %291 = vmatprep.mubr.f32.mxu0 %v86_v48 }
  0xa3   :  { %292 = vmatmul.mubr.f32.vlgmr.msra.gmra.mrb[0].mxu0 %v87_v49 }
 0x176   :  { %v293_v51 = vpop.f32.mrb[0].mxu0 }
 0x177   :  { %v183_v52 = vadd.f32 %v293_v51, %v239_v50  ;;  %v177_v53 = vpop.f32.mrb[1].mxu0 }
 0x178   :  { %v178_v54 = vadd.f32 %v239_v50, %v177_v53 }
 0x179   :  { %v187_v56 = vmax.f32 %v183_v52, 0.0 }
 0x17a   :  { %v186_v57 = vmax.f32 %v178_v54, 0.0 }
 0x17b   :  { %v196_v58 = vmul.f32 %v240_v55, %v187_v56 }
 0x17c   :  { %v195_v59 = vmul.f32 %v240_v55, %v186_v57 }
 0x17d   :  { %199 = vadd.xlane.f32.xlu0 %v196_v58 }
 0x17e   :  { %197 = vadd.xlane.f32.xlu1 %v195_v59 }
 0x20a   :  { %v200_v0 = vpop.xlane.xlu0 %199 }
 0x20b   :  { %v204_v2 = vadd.f32 %v202_v62, %v200_v0  ;;  %v198_v3 = vpop.xlane.xlu1 %197 }
 0x20c   :  { %v203_v4 = vadd.f32 %v202_v62, %v198_v3 }
 0x20d   :  { %v217_v5 = vrot.slane %v204_v2, %v216_v63 }
 0x20e   :  { %v212_v6 = vrot.slane %v203_v4, %v211_v1 }
 0x210   :  { %v219_v7 = vsel %vm218_vm0, %v217_v5, %v212_v6 }
 0x211   :  { %222 = vst.msk [vmem:[#allocation6] sm:$0x1] %vm221_vm1, %v219_v7 }
 0x212   :  { %369 = shalt.err (!%p366_p12)
}
 0x213   :  { %s370_s28 = scalar_lea.hbm %s482_s7, 16 }
 0x214   :  { %p371_p13 = scmp.ne.s32.totalorder %s482_s7, %s370_s28  ;;  %p374_p0 = scmp.lt.u32.totalorder %s370_s28, %s482_s7 }
 0x216   :  { %p376_p1 = pnand %p374_p0, %p371_p13 }
 0x218   :  { %379 = shalt.err (!%p376_p1)
}
 0x219   :  { %232 = dma.vmem_to_hbm [thread:$0]  %s230_s5, 16, %s482_s7, [#allocation5]  }
 0x21a   :  { %382 = dma.done.wait [#allocation5], 16  }
 0x21b   :  { %383 = vsyncadd [#allocation5], 4294967280 }
 0x21c   :  { %236 = vsyncpa [#allocation4], 1 }
 0x21d   :  { %237 = vsyncpa [#allocation5], 1 }

</bundles_post_ra>
